<compile_context>
chip_gen: v7x
topology: tpu7x:2x2x1
jax: 0.10.0
libtpu: 0.0.40
codegen_flags: <defaults>
</compile_context>

<pallas_src>
import jax
import jax.numpy as jnp
from jax.experimental import pallas as pl
from jax.experimental.pallas import tpu as pltpu

_LANES = 128          # vreg lane width: atoms map onto this axis
_IDX_SUBLANES = 32    # native sublane tile for int8 blocks


def _round_up(x, m):
    return ((x + m - 1) // m) * m


def _per_species_scale_shift_kernel(scales_ref, shifts_ref, idx_ref, x_ref, o_ref):
    # scales_ref, shifts_ref : (T,)              float32, SMEM (whole vectors)
    # idx_ref                : (tile_rows, 128)  int8    per-atom species index
    # x_ref                  : (tile_rows, 128)  per-atom scalar property
    # o_ref                  : (tile_rows, 128)  output
    idx = idx_ref[...].astype(jnp.int32)
    x = x_ref[...].astype(jnp.float32)

    num_types = scales_ref.shape[0]

    # Unrolled compare+select chain over the (small) number of species.
    # Stays on full-width vregs in the VPU; no one-hot, no XLU reduction.
    # Precondition (same as torch indexing): 0 <= idx < num_types.
    scale = jnp.zeros(x.shape, jnp.float32)
    shift = jnp.zeros(x.shape, jnp.float32)
    for t in range(num_types):
        m = idx == t
        scale = jnp.where(m, scales_ref[t], scale)
        shift = jnp.where(m, shifts_ref[t], shift)

    o_ref[...] = (scale * x + shift).astype(o_ref.dtype)


def per_species_scale_shift(in_field, species_idx, scales=None, shifts=None, *,
                            tile_rows=512):
    """Pallas implementation of PerSpeciesScaleShift.forward.

    in_field:    [N, 1] or [N]  per-atom scalar ('0e') property
    species_idx: [N]            integer atom-type indices in [0, num_types)
    scales:      [T] or None    per-type scales  (None -> has_scales=False)
    shifts:      [T] or None    per-type shifts  (None -> has_shifts=False)
    returns:     same shape/dtype as in_field
    """
    x = jnp.asarray(in_field)
    orig_shape = x.shape
    if x.ndim == 2:
        # '0e' irrep => per-atom scalar field of shape [N, 1].
        assert x.shape[1] == 1, "PerSpeciesScaleShift expects a per-atom scalar ('0e') field"
        x_flat = x[:, 0]
    elif x.ndim == 1:
        x_flat = x
    else:
        raise ValueError("in_field must be [N] or [N, 1]")
    # TODO(synk): fields with D > 1 are outside the '0e' spec of this module and are not handled.

    if scales is None and shifts is None:
        # Module returns the data unchanged when it has neither scales nor shifts.
        return x

    n = x_flat.shape[0]
    out_dtype = x.dtype

    num_types = int((scales if scales is not None else shifts).shape[0])
    assert num_types <= 127, "int8 species indices require num_types <= 127"
    scales_f32 = (jnp.ones((num_types,), jnp.float32) if scales is None
                  else jnp.asarray(scales, jnp.float32).reshape(num_types))
    shifts_f32 = (jnp.zeros((num_types,), jnp.float32) if shifts is None
                  else jnp.asarray(shifts, jnp.float32).reshape(num_types))

    # Lane-dense layout: atoms -> (rows, 128). Pad N so rows is a multiple of
    # tile_rows and tile_rows is a multiple of 32 (native int8 sublane tile).
    rows_needed = -(-n // _LANES)
    tile_rows = max(_IDX_SUBLANES, (int(tile_rows) // _IDX_SUBLANES) * _IDX_SUBLANES)
    tile_rows = min(tile_rows, _round_up(rows_needed, _IDX_SUBLANES))
    rows = _round_up(rows_needed, tile_rows)
    n_pad = rows * _LANES

    x_p = jnp.pad(x_flat, (0, n_pad - n)).reshape(rows, _LANES)
    idx_p = jnp.pad(species_idx.astype(jnp.int8), (0, n_pad - n)).reshape(rows, _LANES)

    grid = (rows // tile_rows,)

    # Memory-bound kernel: tell XLA roughly how many bytes we touch.
    bytes_accessed = (
        n_pad * x_p.dtype.itemsize                 # read in_field
        + n_pad * 1                                # read species idx (int8)
        + n_pad * jnp.dtype(out_dtype).itemsize    # write output
        + 2 * num_types * 4                        # read per-type params
    )
    cost = pl.CostEstimate(flops=2 * n_pad, transcendentals=0,
                           bytes_accessed=bytes_accessed)

    out2 = pl.pallas_call(
        _per_species_scale_shift_kernel,
        out_shape=jax.ShapeDtypeStruct((rows, _LANES), out_dtype),
        grid_spec=pltpu.PrefetchScalarGridSpec(
            num_scalar_prefetch=0,
            grid=grid,
            in_specs=[
                pl.BlockSpec(memory_space=pltpu.MemorySpace.SMEM),    # scales (T,)
                pl.BlockSpec(memory_space=pltpu.MemorySpace.SMEM),    # shifts (T,)
                pl.BlockSpec((tile_rows, _LANES), lambda i: (i, 0)),  # species idx
                pl.BlockSpec((tile_rows, _LANES), lambda i: (i, 0)),  # in_field
            ],
            out_specs=pl.BlockSpec((tile_rows, _LANES), lambda i: (i, 0)),
        ),
        compiler_params=pltpu.CompilerParams(
            dimension_semantics=("parallel",),      # megacore-shardable on v7x
            vmem_limit_bytes=32 * 1024 * 1024,      # safe on v5e/v6e/v7x
        ),
        cost_estimate=cost,
    )(scales_f32, shifts_f32, idx_p, x_p)

    out = out2.reshape(n_pad)[:n]
    return out.reshape(orig_shape)


if __name__ == "__main__":
    key = jax.random.PRNGKey(0)
    k_x, k_idx = jax.random.split(key)

    # Small shapes consistent with the module: per-atom scalar ('0e') property.
    n_atoms = 5000     # deliberately not a multiple of 128: exercises padding
    d = 1              # scalar irrep feature dim
    num_types = 5      # number of atom species/types
    tile_rows = 32     # 32 x 128 atoms per grid step -> grid of 2 after padding

    in_field = jax.random.normal(k_x, (n_atoms, d), dtype=jnp.float32)
    species_idx = jax.random.randint(k_idx, (n_atoms,), 0, num_types, dtype=jnp.int32)

    # Deterministic per-species parameters (shapes from __init__: (num_types,)).
    scales = 0.5 + 0.1 * jnp.arange(num_types, dtype=jnp.float32)
    shifts = 0.2 * jnp.arange(num_types, dtype=jnp.float32) - 0.3

    out = per_species_scale_shift(in_field, species_idx, scales, shifts,
                                  tile_rows=tile_rows)
    out = jax.block_until_ready(out)

    # Pure-JAX reference of the PyTorch forward semantics.
    ref = scales[species_idx].reshape(-1, 1) * in_field
    ref = shifts[species_idx].reshape(-1, 1) + ref
    assert out.shape == (n_atoms, d)
    assert jnp.allclose(out, ref, atol=1e-6, rtol=1e-6)

    print("KERNEL_OK")
</pallas_src>

<mosaic_0001>
module attributes {stable_mosaic.version = 11 : i64} {
  func.func @_per_species_scale_shift_kernel(%arg0: i32, %arg1: memref<5xf32, #tpu.memory_space<smem>>, %arg2: memref<5xf32, #tpu.memory_space<smem>>, %arg3: memref<32x128xi8, #tpu.memory_space<vmem>>, %arg4: memref<32x128xf32, #tpu.memory_space<vmem>>, %arg5: memref<32x128xf32, #tpu.memory_space<vmem>>) attributes {dimension_semantics = [#tpu.dimension_semantics<parallel>], iteration_bounds = array<i64: 2>, scalar_prefetch = 0 : i64, scratch_operands = 0 : i64, tpu.core_type = #tpu.core_type<tc>, window_params = [{transform_indices = @transform_0, window_bounds = array<i64: 5>}, {transform_indices = @transform_1, window_bounds = array<i64: 5>}, {transform_indices = @transform_2, window_bounds = array<i64: 32, 128>}, {transform_indices = @transform_3, window_bounds = array<i64: 32, 128>}, {transform_indices = @transform_4, window_bounds = array<i64: 32, 128>}]} {
    %c0 = arith.constant 0 : index
    %c0_0 = arith.constant 0 : index
    %0 = vector.load %arg3[%c0, %c0_0] : memref<32x128xi8, #tpu.memory_space<vmem>>, vector<32x128xi8>
    %1 = arith.extsi %0 : vector<32x128xi8> to vector<32x128xi32>
    %c0_1 = arith.constant 0 : index
    %c0_2 = arith.constant 0 : index
    %2 = vector.load %arg4[%c0_1, %c0_2] : memref<32x128xf32, #tpu.memory_space<vmem>>, vector<32x128xf32>
    %cst = arith.constant 0.000000e+00 : f32
    %3 = vector.broadcast %cst : f32 to vector<32x128xf32>
    %cst_3 = arith.constant 0.000000e+00 : f32
    %4 = vector.broadcast %cst_3 : f32 to vector<32x128xf32>
    %c0_i32 = arith.constant 0 : i32
    %5 = vector.broadcast %c0_i32 : i32 to vector<32x128xi32>
    %6 = arith.cmpi eq, %1, %5 : vector<32x128xi32>
    %c0_4 = arith.constant 0 : index
    %7 = memref.load %arg1[%c0_4] : memref<5xf32, #tpu.memory_space<smem>>
    %8 = vector.broadcast %7 : f32 to vector<32x128xf32>
    %9 = arith.select %6, %8, %3 : vector<32x128xi1>, vector<32x128xf32>
    %c0_5 = arith.constant 0 : index
    %10 = memref.load %arg2[%c0_5] : memref<5xf32, #tpu.memory_space<smem>>
    %11 = vector.broadcast %10 : f32 to vector<32x128xf32>
    %12 = arith.select %6, %11, %4 : vector<32x128xi1>, vector<32x128xf32>
    %c1_i32 = arith.constant 1 : i32
    %13 = vector.broadcast %c1_i32 : i32 to vector<32x128xi32>
    %14 = arith.cmpi eq, %1, %13 : vector<32x128xi32>
    %c1 = arith.constant 1 : index
    %15 = memref.load %arg1[%c1] : memref<5xf32, #tpu.memory_space<smem>>
    %16 = vector.broadcast %15 : f32 to vector<32x128xf32>
    %17 = arith.select %14, %16, %9 : vector<32x128xi1>, vector<32x128xf32>
    %c1_6 = arith.constant 1 : index
    %18 = memref.load %arg2[%c1_6] : memref<5xf32, #tpu.memory_space<smem>>
    %19 = vector.broadcast %18 : f32 to vector<32x128xf32>
    %20 = arith.select %14, %19, %12 : vector<32x128xi1>, vector<32x128xf32>
    %c2_i32 = arith.constant 2 : i32
    %21 = vector.broadcast %c2_i32 : i32 to vector<32x128xi32>
    %22 = arith.cmpi eq, %1, %21 : vector<32x128xi32>
    %c2 = arith.constant 2 : index
    %23 = memref.load %arg1[%c2] : memref<5xf32, #tpu.memory_space<smem>>
    %24 = vector.broadcast %23 : f32 to vector<32x128xf32>
    %25 = arith.select %22, %24, %17 : vector<32x128xi1>, vector<32x128xf32>
    %c2_7 = arith.constant 2 : index
    %26 = memref.load %arg2[%c2_7] : memref<5xf32, #tpu.memory_space<smem>>
    %27 = vector.broadcast %26 : f32 to vector<32x128xf32>
    %28 = arith.select %22, %27, %20 : vector<32x128xi1>, vector<32x128xf32>
    %c3_i32 = arith.constant 3 : i32
    %29 = vector.broadcast %c3_i32 : i32 to vector<32x128xi32>
    %30 = arith.cmpi eq, %1, %29 : vector<32x128xi32>
    %c3 = arith.constant 3 : index
    %31 = memref.load %arg1[%c3] : memref<5xf32, #tpu.memory_space<smem>>
    %32 = vector.broadcast %31 : f32 to vector<32x128xf32>
    %33 = arith.select %30, %32, %25 : vector<32x128xi1>, vector<32x128xf32>
    %c3_8 = arith.constant 3 : index
    %34 = memref.load %arg2[%c3_8] : memref<5xf32, #tpu.memory_space<smem>>
    %35 = vector.broadcast %34 : f32 to vector<32x128xf32>
    %36 = arith.select %30, %35, %28 : vector<32x128xi1>, vector<32x128xf32>
    %c4_i32 = arith.constant 4 : i32
    %37 = vector.broadcast %c4_i32 : i32 to vector<32x128xi32>
    %38 = arith.cmpi eq, %1, %37 : vector<32x128xi32>
    %c4 = arith.constant 4 : index
    %39 = memref.load %arg1[%c4] : memref<5xf32, #tpu.memory_space<smem>>
    %40 = vector.broadcast %39 : f32 to vector<32x128xf32>
    %41 = arith.select %38, %40, %33 : vector<32x128xi1>, vector<32x128xf32>
    %c4_9 = arith.constant 4 : index
    %42 = memref.load %arg2[%c4_9] : memref<5xf32, #tpu.memory_space<smem>>
    %43 = vector.broadcast %42 : f32 to vector<32x128xf32>
    %44 = arith.select %38, %43, %36 : vector<32x128xi1>, vector<32x128xf32>
    %45 = arith.mulf %41, %2 : vector<32x128xf32>
    %46 = arith.addf %45, %44 : vector<32x128xf32>
    %c0_10 = arith.constant 0 : index
    %c0_11 = arith.constant 0 : index
    %47 = vector.load %arg5[%c0_10, %c0_11] : memref<32x128xf32, #tpu.memory_space<vmem>>, vector<32x128xf32>
    tpu.vector_store %arg5[%c0_10, %c0_11], %46 {strides = array<i32>} : memref<32x128xf32, #tpu.memory_space<vmem>>, vector<32x128xf32>,
    return
  }
  func.func @transform_0(%arg0: i32) -> i32 {
    %c0_i32 = arith.constant 0 : i32
    %c0_i32_0 = arith.constant 0 : i32
    return %c0_i32 : i32
  }
  func.func @transform_1(%arg0: i32) -> i32 {
    %c0_i32 = arith.constant 0 : i32
    %c0_i32_0 = arith.constant 0 : i32
    return %c0_i32 : i32
  }
  func.func @transform_2(%arg0: i32) -> (i32, i32) {
    %c0_i32 = arith.constant 0 : i32
    %c0_i32_0 = arith.constant 0 : i32
    return %arg0, %c0_i32 : i32, i32
  }
  func.func @transform_3(%arg0: i32) -> (i32, i32) {
    %c0_i32 = arith.constant 0 : i32
    %c0_i32_0 = arith.constant 0 : i32
    return %arg0, %c0_i32 : i32, i32
  }
  func.func @transform_4(%arg0: i32) -> (i32, i32) {
    %c0_i32 = arith.constant 0 : i32
    %c0_i32_0 = arith.constant 0 : i32
    return %arg0, %c0_i32 : i32, i32
  }
}

</mosaic_0001>

<bundles_post_ra>
// kernel: tpu_custom_call.1
= control target key start
LH: loop header
LB: loop body
LE: loop exit
PB: predicated region body
PF: predicated region fallthrough
CT: control target
= control target key end

     0   :  { %9 = vsyncpa [#allocation5], 0  ;;  %s1132_s0 = inlined_call_operand.hbm [shape: f32[5], index: 0, kind: input, shape index: {}]   ;;  %s1133_s1 = inlined_call_operand.vmem [shape: f32[5], index: 1, kind: input, shape index: {}]   ;;  %s1134_s2 = inlined_call_operand.hbm [shape: s8[64,128], index: 2, kind: input, shape index: {}]   ;;  %s1135_s3 = inlined_call_operand.hbm [shape: f32[64,128], index: 3, kind: input, shape index: {}]   ;;  %s1136_s4 = inlined_call_operand.hbm [shape: f32[64,128], index: 4, kind: output, shape index: {}]  }
   0x1   :  { %10 = vsyncpa [#allocation6], 0 }
   0x2   :  { %11 = vsyncpa [#allocation3], 0 }
   0x3   :  { %13 = vsyncpa [#allocation3 + $0x1], 0 }
   0x4   :  { %14 = vsyncpa [#allocation10], 0 }
   0x5   :  { %16 = vsyncpa [#allocation10 + $0x1], 0 }
   0x6   :  { %17 = vsyncpa [#allocation4], 0 }
   0x7   :  { %19 = vsyncpa [#allocation4 + $0x1], 0  ;;  %s824_s15 = smov 0   ;;  %s826_s16 = smov 0  }
   0x8   :  { %s828_s17 = smov 0   ;;  %s830_s18 = smov 0  }
   0x9 LB: > { %s845_s19 = sadd.s32 4294967295, %s788_s18   ;;  %s515_s20 = sadd.s32 4294967294, %s788_s18   ;;  %s788_s18 = sphi %s830_s18, %s1159_s18   ;;  %s784_s17 = sphi %s828_s17, %s1158_s17   ;;  %s780_s16 = sphi %s826_s16, %s1157_s16   ;;  %s776_s15 = sphi %s824_s15, %s1156_s15  }
   0xa   : > { %p87_p0 = scmp.ne.s32.totalorder %s780_s16, %s776_s15  ;;  %p1137_p1 = scmp.eq.s32.totalorder %s845_s19, 0 }
   0xb   : > { %p143_p3 = scmp.eq.s32.totalorder %s515_s20, 1  ;;  %p516_p5 = scmp.ge.s32.totalorder %s788_s18, 1 }
   0xc   : > { %p854_p4 = por %p1137_p1, %p87_p0  ;;  %p150_p7 = scmp.lt.s32.totalorder %s788_s18, 3 }
   0xd   : > { %p859_p6 = por %p143_p3, %p87_p0  ;;  %s172_s26 = sshll.u32 %s1133_s1, 4  ;;  %s173_s26 = int_to_ptr.vmem [resolvable:$true] %s172_s26 }
   0xe   : > { %s1140_s21 = scalar_select %p854_p4, 1, 0 }
   0xf   : > { %s1141_s22 = scalar_select %p859_p6, 1, 0 }
  0x10   : > { %p864_p8 = pnand %p516_p5, %p150_p7  ;;  %s875_s27 = sadd.s32 1, %s788_s18  }
  0x11   : > { %s71_s29 = ssub.s32 %s788_s18, %s875_s27  ;;  %s74_s30 = sadd.s32 1, %s784_s17 }
  0x12   : > { %p560_p10 = pneg %p864_p8  ;;  %p886_p12 = scmp.eq.s32.totalorder %s71_s29, 0 }
  0x13   : > { %s622_s8 = scalar_lea.hbm %s1132_s0, 16 }
  0x14   : > { %p879_p11 = pnand %p560_p10, %p1137_p1  ;;  %p623_p13 = scmp.ne.s32.totalorder %s1132_s0, %s622_s8 }
  0x15   : > { %p629_p7 = scmp.lt.u32.totalorder %s622_s8, %s1132_s0 }
  0x16   : > { %p624_p0 = pneg %p879_p11 }
  0x18   : > { %p625_p3 = pnand %p624_p0, %p623_p13 }
  0x1a   : > { %p626_p5 = pneg %p625_p3 }
  0x1c   : > { %p631_p10 = pnand %p629_p7, %p626_p5 }
  0x1e   : > { %634 = shalt.err (!%p631_p10)
}
  0x1f   : > { %s790_s13 = smov [#allocation2]   ;;  %s635_s24 = scalar_lea.vmem %s173_s26, 16 }
  0x20   : > { %563 = dma.hbm_to_smem (!%p879_p11), %s1132_s0, 16, %s790_s13, [#allocation5]  }
  0x21   : > { %p636_p9 = scmp.ne.s32.totalorder %s173_s26, %s635_s24  ;;  %p643_p6 = scmp.lt.s32.totalorder %s173_s26, %s173_s26 }
  0x22   : > { %p644_p13 = scmp.lt.s32.totalorder %s635_s24, %s635_s24 }
  0x23   : > { %p638_p1 = pnand %p636_p9, %p624_p0 }
  0x24   : > { %p645_p3 = por %p644_p13, %p643_p6 }
  0x25   : > { %p639_p2 = pneg %p638_p1 }
  0x27   : > { %p646_p4 = pnand %p645_p3, %p639_p2 }
  0x29   : > { %649 = shalt.err (!%p646_p4)
}
  0x2a   : > { %s791_s25 = smov [#allocation7]   ;;  %p81_p1 = scmp.ne.s32.totalorder %s784_s17, %s780_s16 }
  0x2b   : > { %566 = dma.vmem_to_smem (!%p879_p11), %s173_s26, 16, %s791_s25, [#allocation6]  }
  0x2c   : > { %s911_s29 = scalar_select %p886_p12, %s784_s17, %s74_s30  }
  0x2d   : > { %p82_p6 = scmp.eq.s32.totalorder %s788_s18, 0  ;;  %p580_p2 = scmp.lt.s32.totalorder %s788_s18, 2 }
  0x2e   : > { %s918_s6 = sand.u32 1, %s784_s17   ;;  %p1145_p9 = scmp.eq.s32.totalorder %s845_s19, 1 }
  0x2f   : > { %p83_p4 = por %p82_p6, %p81_p1  ;;  %s520_s7 = sshll.u32 %s918_s6, 3 }
  0x30   : > { %p922_p0 = por %p1145_p9, %p81_p1  ;;  %s521_s8 = sshll.u32 %s788_s18, 7 }
  0x31   : > { %s931_s30 = scalar_lea.hbm %s1134_s2, %s521_s8  ;;  %s187_s9 = scalar_lea.vmem [#allocation8], %s520_s7 }
  0x32   : > { %s1146_s28 = scalar_select %p922_p0, 1, 0 }
  0x33   : > { %s194_s10 = sshll.u32 %s187_s9, 4  ;;  %p935_p11 = pnand %p580_p2, %p83_p4  ;;  %s933_s10 = int_to_ptr.vmem [resolvable:$true] %s194_s10 }
  0x34   : > { %s522_s12 = sshll.u32 %s918_s6, 5  ;;  %s184_s13 = scalar_lea.sflag [#allocation3], %s918_s6 }
  0x35   : > { %s650_s14 = scalar_lea.hbm %s931_s30, 128  ;;  %p652_p5 = pneg %p935_p11 }
  0x36   : > { %p651_p12 = scmp.ne.s32.totalorder %s931_s30, %s650_s14  ;;  %s655_s25 = scalar_lea.hbm %s1134_s2, 256 }
  0x37   : > { %p656_p13 = scmp.lt.u32.totalorder %s931_s30, %s1134_s2  ;;  %p657_p3 = scmp.lt.u32.totalorder %s655_s25, %s650_s14 }
  0x38   : > { %p653_p7 = pnand %p652_p5, %p651_p12  ;;  %p659_p6 = scmp.lt.u32.totalorder %s650_s14, %s931_s30 }
  0x39   : > { %p658_p1 = por %p657_p3, %p656_p13 }
  0x3a   : > { %p654_p10 = pneg %p653_p7 }
  0x3b   : > { %p660_p2 = por %p659_p6, %p658_p1 }
  0x3d   : > { %p661_p4 = pnand %p660_p2, %p654_p10 }
  0x3f   : > { %664 = shalt.err (!%p661_p4)
}
  0x40   : > { %s665_s26 = scalar_lea.vmem %s933_s10, 128  ;;  %s792_s5 = smov [#allocation8]  }
  0x41   : > { %p666_p9 = scmp.ne.s32.totalorder %s933_s10, %s665_s26  ;;  %s670_s9 = sshll.u32 %s792_s5, 4  ;;  %s671_s9 = int_to_ptr.vmem [resolvable:$false] %s670_s9 }
  0x42   : > { %s672_s20 = scalar_lea.vmem %s671_s9, 256  ;;  %p673_p0 = scmp.lt.s32.totalorder %s933_s10, %s671_s9 }
  0x43   : > { %p668_p12 = pnand %p666_p9, %p652_p5  ;;  %p674_p13 = scmp.lt.s32.totalorder %s672_s20, %s665_s26 }
  0x45   : > { %p669_p7 = pneg %p668_p12  ;;  %p675_p3 = por %p674_p13, %p673_p0 }
  0x47   : > { %p676_p1 = pnand %p675_p3, %p669_p7 }
  0x49   : > { %679 = shalt.err (!%p676_p1)
}
  0x4a   : > { %570 = dma.hbm_to_vmem [thread:$0]  (!%p935_p11), %s931_s30, 128, %s933_s10, %s184_s13  }
  0x4b   : > { %s544_s14 = sshll.u32 %s788_s18, 9  ;;  %s205_s24 = scalar_lea.vmem [#allocation9], %s522_s12 }
  0x4c   : > { %s212_s25 = sshll.u32 %s205_s24, 4  ;;  %s972_s26 = scalar_lea.hbm %s1135_s3, %s544_s14  ;;  %s974_s25 = int_to_ptr.vmem [resolvable:$true] %s212_s25 }
  0x4d   : > { %s202_s5 = scalar_lea.sflag [#allocation10], %s918_s6  ;;  %s680_s9 = scalar_lea.hbm %s972_s26, 512 }
  0x4e   : > { %p681_p0 = scmp.ne.s32.totalorder %s972_s26, %s680_s9  ;;  %s685_s12 = scalar_lea.hbm %s1135_s3, 1024 }
  0x4f   : > { %p686_p2 = scmp.lt.u32.totalorder %s972_s26, %s1135_s3  ;;  %p687_p4 = scmp.lt.u32.totalorder %s685_s12, %s680_s9 }
  0x50   : > { %p683_p10 = pnand %p681_p0, %p652_p5  ;;  %p689_p12 = scmp.lt.u32.totalorder %s680_s9, %s972_s26 }
  0x51   : > { %p688_p9 = por %p687_p4, %p686_p2 }
  0x52   : > { %p684_p6 = pneg %p683_p10 }
  0x53   : > { %p690_p7 = por %p689_p12, %p688_p9 }
  0x55   : > { %p691_p13 = pnand %p690_p7, %p684_p6 }
  0x57   : > { %694 = shalt.err (!%p691_p13)
}
  0x58   : > { %s695_s14 = scalar_lea.vmem %s974_s25, 512  ;;  %s793_s24 = smov [#allocation9]  }
  0x59   : > { %p696_p3 = scmp.ne.s32.totalorder %s974_s25, %s695_s14  ;;  %s700_s7 = sshll.u32 %s793_s24, 4  ;;  %s701_s7 = int_to_ptr.vmem [resolvable:$false] %s700_s7 }
  0x5a   : > { %s702_s8 = scalar_lea.vmem %s701_s7, 1024  ;;  %p703_p10 = scmp.lt.s32.totalorder %s974_s25, %s701_s7 }
  0x5b   : > { %p698_p1 = pnand %p696_p3, %p652_p5  ;;  %p704_p2 = scmp.lt.s32.totalorder %s702_s8, %s695_s14 }
  0x5d   : > { %p699_p0 = pneg %p698_p1  ;;  %p705_p4 = por %p704_p2, %p703_p10 }
  0x5f   : > { %p706_p9 = pnand %p705_p4, %p699_p0 }
  0x61   : > { %709 = shalt.err (!%p706_p9)
}
  0x62   : > { %s794_s9 = smov 128   ;;  %s795_s30 = smov 8  }
  0x63   : > { %573 = dma.hbm_to_vmem [thread:$0]  (!%p935_p11), %s972_s26, 512, %s974_s25, %s202_s5, %s794_s9, %s794_s9, %s795_s30  }
  0x64   : > { %224 = sbr.rel (%p864_p8) target bundleno = 162 (0xa2), region = 36  ;;  %p1148_p5 = scmp.eq.s32.totalorder (!%p864_p8), %s845_s19, 0 }
  0x6b   : > { %755 = dma.done.wait (%p1148_p5), [#allocation5], 16   ;;  %p1149_p6 = pmov %p1148_p5 }
  0x6c   : > { %p1150_p12 = pmov %p1148_p5 }
  0x6d   : > { %757 = vsyncadd (%p1149_p6), [#allocation5], 4294967280 }
  0x6e   : > { %759 = dma.done.wait (%p1150_p12), [#allocation6], 16   ;;  %p1151_p7 = pmov %p1148_p5 }
  0x6f   : > { %s1013_s11 = sand.u32 1, %s780_s16   ;;  %p1152_p8 = scmp.ne.s32.totalorder %s1140_s21, 0 }
  0x70   : > { %761 = vsyncadd (%p1151_p7), [#allocation6], 4294967280  ;;  %s528_s23 = sshll.u32 %s1013_s11, 3  ;;  %s235_s6 = scalar_lea.sflag [#allocation3], %s1013_s11 }
  0x71   : > { %s238_s25 = scalar_lea.vmem [#allocation8], %s528_s23 }
  0x72   : > { %763 = dma.done.wait (%p1152_p8), %s235_s6, 128  }
  0x73   : > { %765 = vsyncadd (%p1152_p8), %s235_s6, 4294967168  ;;  %s529_s26 = sshll.u32 %s1013_s11, 5  ;;  %s244_s5 = scalar_lea.sflag [#allocation10], %s1013_s11 }
  0x74   : > { %s1025_s10 = scalar_lea.vmem [#allocation9], %s529_s26 }
  0x75   : > { %767 = dma.done.wait (%p1152_p8), %s244_s5, 512  }
  0x76   : > { %769 = vsyncadd (%p1152_p8), %s244_s5, 4294966784 }
  0x77   : > { %252 = sfence }
  0x78   : > { %v280_v0 = vld [vmem:[%s238_s25] sm:$0xff]  ;;  %s293_s12 = sld [smem:[#allocation2]]  ;;  %s531_s20 = sld [smem:[#allocation2 + $0x1]]  ;;  %v285_v18 = vld [vmem:[%s1025_s10] sm:$0xff]  ;;  %v286_v29 = vld [vmem:[%s1025_s10 + $0x8] sm:$0xff] }
  0x79   : > { %v281_v1 = vunpack.c.0.s8 %v280_v0  ;;  %s299_s13 = sld [smem:[#allocation7]]  ;;  %v282_v2 = vunpack.c.1.s8 %v280_v0  ;;  %s532_s14 = sld [smem:[#allocation7 + $0x1]]  ;;  %v1031_v3 = vunpack.c.2.s8 %v280_v0  ;;  %v1033_v4 = vunpack.c.3.s8 %v280_v0  ;;  %v287_v45 = vld [vmem:[%s1025_s10 + $0x10] sm:$0xff]  ;;  %v288_v57 = vld [vmem:[%s1025_s10 + $0x18] sm:$0xff] }
  0x7a   : > { %s533_s24 = sld [smem:[#allocation2 + $0x2]]  ;;  %s535_s8 = sld [smem:[#allocation2 + $0x3]] }
  0x7b   : > { %vm289_vm0 = vcmp.eq.s32.totalorder %v281_v1, 0  ;;  %vm305_vm1 = vcmp.eq.s32.totalorder %v281_v1, 1  ;;  %vm321_vm2 = vcmp.eq.s32.totalorder %v281_v1, 2  ;;  %s534_s7 = sld [smem:[#allocation7 + $0x2]]  ;;  %vm337_vm3 = vcmp.eq.s32.totalorder %v281_v1, 3  ;;  %s536_s9 = sld [smem:[#allocation7 + $0x3]] }
  0x7c   : > { %vm353_vm4 = vcmp.eq.s32.totalorder %v281_v1, 4  ;;  %vm290_vm5 = vcmp.eq.s32.totalorder %v282_v2, 0  ;;  %s537_s21 = sld [smem:[#allocation2 + $0x4]]  ;;  %vm306_vm6 = vcmp.eq.s32.totalorder %v282_v2, 1  ;;  %vm322_vm7 = vcmp.eq.s32.totalorder %v282_v2, 2  ;;  %s1068_s23 = scalar_lea.vmem [#allocation11], %s529_s26 }
  0x7d   : > { %s538_s30 = sld [smem:[#allocation7 + $0x4]]  ;;  %vm338_vm8 = vcmp.eq.s32.totalorder %v282_v2, 3  ;;  %vm354_vm9 = vcmp.eq.s32.totalorder %v282_v2, 4  ;;  %vm291_vm10 = vcmp.eq.s32.totalorder %v1031_v3, 0  ;;  %vm307_vm11 = vcmp.eq.s32.totalorder %v1031_v3, 1  ;;  %s395_s6 = sshll.u32 %s1068_s23, 4  ;;  %s1082_s6 = int_to_ptr.vmem [resolvable:$true] %s395_s6 }
  0x7e   : > { %v294_v5 = vstv %s293_s12  ;;  %v310_v8 = vstv %s531_s20  ;;  %vm323_vm12 = vcmp.eq.s32.totalorder %v1031_v3, 2  ;;  %vm339_vm13 = vcmp.eq.s32.totalorder %v1031_v3, 3  ;;  %s545_s25 = sshll.u32 %s845_s19, 9  ;;  %s382_s12 = scalar_lea.sflag [#allocation4], %s1013_s11 }
  0x7f   : > { %v295_v6 = vsel %vm289_vm0, %v294_v5, 0.0  ;;  %v300_v7 = vstv %s299_s13  ;;  %v296_v9 = vsel %vm290_vm5, %v294_v5, 0.0  ;;  %v316_v12 = vstv %s532_s14  ;;  %s1087_s10 = scalar_lea.hbm %s1136_s4, %s545_s25  ;;  %s710_s13 = scalar_lea.vmem %s1082_s6, 512 }
  0x80   : > { %v301_v10 = vsel %vm289_vm0, %v300_v7, 0.0  ;;  %v311_v11 = vsel %vm305_vm1, %v310_v8, %v295_v6  ;;  %v326_v13 = vstv %s533_s24  ;;  %v302_v17 = vsel %vm290_vm5, %v300_v7, 0.0  ;;  %p711_p11 = scmp.ne.s32.totalorder %s1082_s6, %s710_s13  ;;  %p1153_p13 = scmp.ne.s32.totalorder %s1146_s28, 0 }
  0x81   : > { %v317_v14 = vsel %vm305_vm1, %v316_v12, %v301_v10  ;;  %v327_v15 = vsel %vm321_vm2, %v326_v13, %v311_v11  ;;  %v332_v16 = vstv %s534_s7  ;;  %v342_v20 = vstv %s535_s8  ;;  %s796_s19 = smov [#allocation11]  }
  0x82   : > { %v333_v19 = vsel %vm321_vm2, %v332_v16, %v317_v14  ;;  %v348_v21 = vstv %s536_s9  ;;  %v312_v22 = vsel %vm306_vm6, %v310_v8, %v296_v9  ;;  %v343_v23 = vsel %vm337_vm3, %v342_v20, %v327_v15  ;;  %p712_p3 = pnand %p711_p11, %p1153_p13  ;;  %s714_s20 = sshll.u32 %s796_s19, 4  ;;  %s715_s20 = int_to_ptr.vmem [resolvable:$false] %s714_s20 }
  0x83   : > { %v349_v24 = vsel %vm337_vm3, %v348_v21, %v333_v19  ;;  %v358_v25 = vstv %s537_s21  ;;  %v364_v26 = vstv %s538_s30  ;;  %v318_v30 = vsel %vm306_vm6, %v316_v12, %v302_v17  ;;  %s716_s14 = scalar_lea.vmem %s715_s20, 1024  ;;  %p717_p0 = scmp.lt.s32.totalorder %s1082_s6, %s715_s20 }
  0x84   : > { %v359_v27 = vsel %vm353_vm4, %v358_v25, %v343_v23  ;;  %v365_v28 = vsel %vm353_vm4, %v364_v26, %v349_v24  ;;  %v328_v31 = vsel %vm322_vm7, %v326_v13, %v312_v22  ;;  %v334_v33 = vsel %vm322_vm7, %v332_v16, %v318_v30  ;;  %p713_p1 = pneg %p712_p3  ;;  %p718_p10 = scmp.lt.s32.totalorder %s716_s14, %s710_s13 }
  0x85   : > { %v369_v32 = vmul.f32 %v359_v27, %v285_v18  ;;  %v344_v34 = vsel %vm338_vm8, %v342_v20, %v328_v31  ;;  %v297_v35 = vsel %vm291_vm10, %v294_v5, 0.0  ;;  %v350_v36 = vsel %vm338_vm8, %v348_v21, %v334_v33 }
  0x86   : > { %v360_v37 = vsel %vm354_vm9, %v358_v25, %v344_v34  ;;  %v303_v38 = vsel %vm291_vm10, %v300_v7, 0.0  ;;  %v366_v40 = vsel %vm354_vm9, %v364_v26, %v350_v36  ;;  %v313_v42 = vsel %vm307_vm11, %v310_v8, %v297_v35  ;;  %p719_p2 = por %p718_p10, %p717_p0 }
  0x87   : > { %v373_v39 = vadd.f32 %v369_v32, %v365_v28  ;;  %v370_v41 = vmul.f32 %v360_v37, %v286_v29  ;;  %v319_v43 = vsel %vm307_vm11, %v316_v12, %v303_v38  ;;  %vm355_vm14 = vcmp.eq.s32.totalorder %v1031_v3, 4 }
  0x88   : > { %v329_v46 = vsel %vm323_vm12, %v326_v13, %v313_v42  ;;  %v335_v47 = vsel %vm323_vm12, %v332_v16, %v319_v43  ;;  %vm292_vm15 = vcmp.eq.s32.totalorder %v1033_v4, 0  ;;  %vm308_vm0 = vcmp.eq.s32.totalorder %v1033_v4, 1  ;;  %p720_p4 = pnand %p719_p2, %p713_p1 }
  0x89   : > { %377 = vst [vmem:[%s1068_s23] sm:$0xff] %v373_v39  ;;  %v374_v44 = vadd.f32 %v370_v41, %v366_v40  ;;  %v345_v48 = vsel %vm339_vm13, %v342_v20, %v329_v46  ;;  %v351_v49 = vsel %vm339_vm13, %v348_v21, %v335_v47  ;;  %v298_v50 = vsel %vm292_vm15, %v294_v5, 0.0 }
  0x8a   : > { %v304_v51 = vsel %vm292_vm15, %v300_v7, 0.0  ;;  %v361_v52 = vsel %vm355_vm14, %v358_v25, %v345_v48  ;;  %v367_v53 = vsel %vm355_vm14, %v364_v26, %v351_v49  ;;  %vm324_vm1 = vcmp.eq.s32.totalorder %v1033_v4, 2 }
  0x8b   : > { %378 = vst [vmem:[%s1068_s23 + $0x8] sm:$0xff] %v374_v44  ;;  %v371_v54 = vmul.f32 %v361_v52, %v287_v45  ;;  %v314_v55 = vsel %vm308_vm0, %v310_v8, %v298_v50  ;;  %v320_v56 = vsel %vm308_vm0, %v316_v12, %v304_v51  ;;  %vm340_vm2 = vcmp.eq.s32.totalorder %v1033_v4, 3 }
  0x8c   : > { %v330_v58 = vsel %vm324_vm1, %v326_v13, %v314_v55  ;;  %v336_v59 = vsel %vm324_vm1, %v332_v16, %v320_v56  ;;  %vm356_vm3 = vcmp.eq.s32.totalorder %v1033_v4, 4 }
  0x8d   : > { %v375_v60 = vadd.f32 %v371_v54, %v367_v53  ;;  %v346_v61 = vsel %vm340_vm2, %v342_v20, %v330_v58  ;;  %v352_v62 = vsel %vm340_vm2, %v348_v21, %v336_v59 }
  0x8e   : > { %v362_v63 = vsel %vm356_vm3, %v358_v25, %v346_v61  ;;  %v368_v0 = vsel %vm356_vm3, %v364_v26, %v352_v62 }
  0x8f   : > { %379 = vst [vmem:[%s1068_s23 + $0x10] sm:$0xff] %v375_v60  ;;  %v372_v1 = vmul.f32 %v362_v63, %v288_v57 }
  0x91   : > { %v376_v2 = vadd.f32 %v372_v1, %v368_v0 }
  0x93   : > { %380 = vst [vmem:[%s1068_s23 + $0x18] sm:$0xff] %v376_v2 }
  0x94   : > { %723 = shalt.err (!%p720_p4)
}
  0x95   : > { %s724_s24 = scalar_lea.hbm %s1087_s10, 512  ;;  %s728_s9 = scalar_lea.hbm %s1136_s4, 1024 }
  0x96   : > { %p725_p9 = scmp.ne.s32.totalorder %s1087_s10, %s724_s24  ;;  %p729_p12 = scmp.lt.u32.totalorder %s1087_s10, %s1136_s4 }
  0x97   : > { %p730_p7 = scmp.lt.u32.totalorder %s728_s9, %s724_s24  ;;  %p732_p11 = scmp.lt.u32.totalorder %s724_s24, %s1087_s10 }
  0x98   : > { %p726_p5 = pnand %p725_p9, %p1153_p13 }
  0x99   : > { %p731_p8 = por %p730_p7, %p729_p12 }
  0x9a   : > { %p727_p6 = pneg %p726_p5 }
  0x9b   : > { %p733_p3 = por %p732_p11, %p731_p8 }
  0x9d   : > { %p734_p1 = pnand %p733_p3, %p727_p6 }
  0x9f   : > { %737 = shalt.err (!%p734_p1)
}
  0xa0   : > { %s797_s23 = smov 128   ;;  %s798_s25 = smov 8  }
  0xa1   : > { %558 = dma.vmem_to_hbm [thread:$0]  (%p1153_p13), %s1082_s6, 512, %s1087_s10, %s382_s12, %s797_s23, %s797_s23, %s798_s25  }
  0xa2 PF: > { %s410_s26 = sand.u32 1, %s776_s15   ;;  %p1154_p0 = scmp.ne.s32.totalorder %s1141_s22, 0 }
  0xa3   : > { %p1155_p10 = scmp.ge.s32.totalorder %s788_s18, 2  ;;  %s411_s5 = scalar_lea.sflag [#allocation4], %s410_s26 }
  0xa5   : > { %p575_p2 = pnand %p1155_p10, %p1154_p0 }
  0xa7   : > { %771 = dma.done.wait (!%p575_p2), %s411_s5, 512  }
  0xa8   : > { %773 = vsyncadd (!%p575_p2), %s411_s5, 4294966784  ;;  %p22_p4 = scmp.ge.s32.totalorder %s875_s27, 4   ;;  %s1156_s15 = smov %s780_s16 }
  0xa9   : > { %s1157_s16 = smov %s784_s17  ;;  %s1158_s17 = smov %s911_s29 }
  0xaa   : > { %s1159_s18 = smov %s875_s27  ;;  %24 = sbr.rel (!%p22_p4) target bundleno = 9 (0x9), region = 104 }
  0xb1   :  { %416 = vsyncpa [#allocation3], 1 }
  0xb2   :  { %418 = vsyncpa [#allocation3 + $0x1], 1 }
  0xb3   :  { %419 = vsyncpa [#allocation10], 1 }
  0xb4   :  { %421 = vsyncpa [#allocation10 + $0x1], 1 }
  0xb5   :  { %422 = vsyncpa [#allocation4], 1 }
  0xb6   :  { %424 = vsyncpa [#allocation4 + $0x1], 1 }
  0xb7   :  { %425 = vsyncpa [#allocation5], 1 }
  0xb8   :  { %427 = vsyncpa [#allocation5 + $0x1], 1 }
  0xb9   :  { %428 = vsyncpa [#allocation6], 1 }
  0xba   :  { %430 = vsyncpa [#allocation6 + $0x1], 1 }

</bundles_post_ra>
